<compile_context>
chip_gen: v6e
topology: v6e:2x2x1
jax: 0.10.0
libtpu: 0.0.40
codegen_flags: <defaults>
</compile_context>

<pallas_src>
import math

import jax
import jax.numpy as jnp
from jax.experimental import pallas as pl
from jax.experimental.pallas import tpu as pltpu

NUM_BANDS = 2       # num_bands
EMB       = 32      # embedding_size (small, consistent with module)
N_HARM    = 16      # fourier harmonics in the time encoder
TMAX      = 1500.0  # Tmax


def time_film_kernel(x_ref, t_ref, wt_ref, b_ref, wl_ref, o_ref):
    # Block shapes (one band, one row-tile; rows on the lane axis):
    #   x_ref, t_ref : [1, 1, R_TILE]
    #   wt_ref       : [1, 2E, 2H]    fused [Wa | Wb]^T, bf16
    #   b_ref        : [1, 2E, 1]     fused [ba ; bb], f32
    #   wl_ref       : [1, E, 1]      Linear(1, E) weight, f32
    #   o_ref        : [1, E, R_TILE]
    t = t_ref[0]                                   # [1, R_TILE]
    x = x_ref[0]                                   # [1, R_TILE]

    # Fourier features via the angle-addition recurrence:
    # only sin/cos of the base angle use transcendentals.
    base = t * (2.0 * math.pi / TMAX)              # k = 1 angle
    s1 = jnp.sin(base)
    c1 = jnp.cos(base)
    sins, coss = [s1], [c1]
    s, c = s1, c1
    for _ in range(N_HARM - 1):
        s, c = s * c1 + c * s1, c * c1 - s * s1    # 4 mul + 2 add per harmonic
        sins.append(s)
        coss.append(c)
    harm = jnp.concatenate(sins + coss, axis=0)    # [2H, R_TILE] sublane stack

    # Single fused alpha/beta matmul on the MXU (bf16 in, f32 accumulate).
    ab = jnp.dot(wt_ref[0], harm.astype(jnp.bfloat16),
                 preferred_element_type=jnp.float32) + b_ref[0]   # [2E, R_TILE]
    alpha = ab[:EMB]                               # [E, R_TILE]
    beta = ab[EMB:]                                # [E, R_TILE]

    lin = wl_ref[0] * x                            # [E,1] * [1,R] -> [E, R_TILE]
    o_ref[0] = alpha * lin + beta                  # single lane-dense store


def _round_up(a, m):
    return ((a + m - 1) // m) * m


def time_handler_forward(x, t, mask, params, r_tile=512):
    """x, t, mask: [B, T, NB] float32. Returns (x_sorted, m_sorted, t_sorted)."""
    B, T, NB = x.shape
    E = EMB
    R = B * T
    wt_ab, b_ab, wl = params

    # Row-tile sizing: R_TILE multiple of 128 (lane-dense), R padded to fit.
    r_pad128 = _round_up(R, 128)
    r_tile = min(_round_up(r_tile, 128), r_pad128)
    R_pad = _round_up(R, r_tile)
    n_r_tiles = R_pad // r_tile

    # Lane-dense kernel layout: [NB, 1, R_pad] (band-major, rows on lanes).
    xk = jnp.transpose(x, (2, 0, 1)).reshape(NB, 1, R).astype(jnp.float32)
    tk = jnp.transpose(t, (2, 0, 1)).reshape(NB, 1, R).astype(jnp.float32)
    pad = R_pad - R
    if pad:
        xk = jnp.pad(xk, ((0, 0), (0, 0), (0, pad)))
        tk = jnp.pad(tk, ((0, 0), (0, 0), (0, pad)))

    out = pl.pallas_call(
        time_film_kernel,
        out_shape=jax.ShapeDtypeStruct((NB, E, R_pad), jnp.float32),
        grid_spec=pltpu.PrefetchScalarGridSpec(
            num_scalar_prefetch=0,
            grid=(NB, n_r_tiles),                        # band outer, rows inner
            in_specs=[
                pl.BlockSpec((1, 1, r_tile), lambda nb, r: (nb, 0, r)),          # x
                pl.BlockSpec((1, 1, r_tile), lambda nb, r: (nb, 0, r)),          # t
                pl.BlockSpec((1, 2 * E, 2 * N_HARM), lambda nb, r: (nb, 0, 0)),  # [Wa|Wb]^T
                pl.BlockSpec((1, 2 * E, 1), lambda nb, r: (nb, 0, 0)),           # [ba;bb]
                pl.BlockSpec((1, E, 1), lambda nb, r: (nb, 0, 0)),               # Wl
            ],
            out_specs=pl.BlockSpec((1, E, r_tile), lambda nb, r: (nb, 0, r)),
        ),
        compiler_params=pltpu.CompilerParams(
            dimension_semantics=("parallel", "parallel"),
            vmem_limit_bytes=64 * 1024 * 1024),
    )(xk, tk, wt_ab, b_ab, wl)

    # One XLA transpose of the largest tensor: [NB, E, R] -> [B, NB*T, E]
    # (torch.cat(..., axis=1): band 0's T steps first, then band 1's, etc.)
    x_mod = jnp.transpose(out[:, :, :R].reshape(NB, E, B, T),
                          (2, 0, 3, 1)).reshape(B, NB * T, E)
    t2d = jnp.moveaxis(t, -1, 1).reshape(B, NB * T).astype(jnp.float32)
    m2d = jnp.moveaxis(mask, -1, 1).reshape(B, NB * T).astype(jnp.float32)

    # Masked time-sort + gather (plain JAX glue; no Pallas sort primitive).
    # jnp.where is robust to non-binary masks; sentinel safe since t <= Tmax.
    keys = jnp.where(m2d > 0, t2d, 9999999.0)                       # [B, NB*T]
    iota = jax.lax.broadcasted_iota(jnp.int32, keys.shape, 1)
    _, t_s, m_s, idx = jax.lax.sort((keys, t2d, m2d, iota),
                                    dimension=1, num_keys=1, is_stable=True)
    x_sorted = jnp.take_along_axis(x_mod, idx[:, :, None], axis=1)  # one big gather
    m_sorted = m_s[:, :, None]
    t_sorted = t_s[:, :, None]
    return x_sorted, m_sorted, t_sorted


def init_params(key):
    """Deterministic synthetic parameters. clones() deep-copies one module, so
    all bands start from identical weights -> tile one init across NUM_BANDS.
    Weights are pre-fused ([Wa|Wb]) and pre-transposed for the lane-dense
    in-kernel matmul; matmul weights are pre-cast to bf16 once here."""
    k1, k2, k3, k4, k5 = jax.random.split(key, 5)
    wa = jax.random.normal(k1, (2 * N_HARM, EMB), dtype=jnp.float32) * 0.02
    ba = jax.random.normal(k2, (EMB,), dtype=jnp.float32) * 0.02
    wb = jax.random.normal(k3, (2 * N_HARM, EMB), dtype=jnp.float32) * 0.02
    bb = jax.random.normal(k4, (EMB,), dtype=jnp.float32) * 0.02
    wl = jax.random.normal(k5, (EMB,), dtype=jnp.float32) * 0.02
    wt_ab = jnp.concatenate([wa.T, wb.T], axis=0).astype(jnp.bfloat16)  # [2E, 2H]
    b_ab = jnp.concatenate([ba, bb], axis=0)[:, None]                    # [2E, 1]
    wl = wl[:, None]                                                     # [E, 1]
    tile = lambda a: jnp.tile(a[None], (NUM_BANDS,) + (1,) * a.ndim)
    return tile(wt_ab), tile(b_ab), tile(wl)


if __name__ == "__main__":
    B, T = 2, 8
    key = jax.random.PRNGKey(0)
    kx, kt, km, kp = jax.random.split(key, 4)

    x = jax.random.normal(kx, (B, T, NUM_BANDS), dtype=jnp.float32)
    t = jax.random.uniform(kt, (B, T, NUM_BANDS), minval=0.0, maxval=TMAX,
                           dtype=jnp.float32)
    mask = (jax.random.uniform(km, (B, T, NUM_BANDS)) > 0.3).astype(jnp.float32)

    params = init_params(kp)

    x_sorted, m_sorted, t_sorted = time_handler_forward(x, t, mask, params)
    jax.block_until_ready((x_sorted, m_sorted, t_sorted))

    assert x_sorted.shape == (B, NUM_BANDS * T, EMB)
    assert m_sorted.shape == (B, NUM_BANDS * T, 1)
    assert t_sorted.shape == (B, NUM_BANDS * T, 1)
    assert bool(jnp.all(jnp.isfinite(x_sorted)))
    print("KERNEL_OK")
</pallas_src>

<mosaic_0001>
module attributes {stable_mosaic.version = 11 : i64} {
  func.func @time_film_kernel(%arg0: i32, %arg1: i32, %arg2: memref<1x1x128xf32, #tpu.memory_space<vmem>>, %arg3: memref<1x1x128xf32, #tpu.memory_space<vmem>>, %arg4: memref<1x64x32xbf16, #tpu.memory_space<vmem>>, %arg5: memref<1x64x1xf32, #tpu.memory_space<vmem>>, %arg6: memref<1x32x1xf32, #tpu.memory_space<vmem>>, %arg7: memref<1x32x128xf32, #tpu.memory_space<vmem>>) attributes {dimension_semantics = [#tpu.dimension_semantics<parallel>, #tpu.dimension_semantics<parallel>], iteration_bounds = array<i64: 2, 1>, scalar_prefetch = 0 : i64, scratch_operands = 0 : i64, tpu.core_type = #tpu.core_type<tc>, window_params = [{transform_indices = @transform_0, window_bounds = array<i64: 1, 1, 128>}, {transform_indices = @transform_1, window_bounds = array<i64: 1, 1, 128>}, {transform_indices = @transform_2, window_bounds = array<i64: 1, 64, 32>}, {transform_indices = @transform_3, window_bounds = array<i64: 1, 64, 1>}, {transform_indices = @transform_4, window_bounds = array<i64: 1, 32, 1>}, {transform_indices = @transform_5, window_bounds = array<i64: 1, 32, 128>}]} {
    %c0 = arith.constant 0 : index
    %c0_0 = arith.constant 0 : index
    %c0_1 = arith.constant 0 : index
    %0 = vector.load %arg3[%c0, %c0_0, %c0_1] : memref<1x1x128xf32, #tpu.memory_space<vmem>>, vector<1x1x128xf32>
    %1 = vector.shape_cast %0 : vector<1x1x128xf32> to vector<1x128xf32>
    %c0_2 = arith.constant 0 : index
    %c0_3 = arith.constant 0 : index
    %c0_4 = arith.constant 0 : index
    %2 = vector.load %arg2[%c0_2, %c0_3, %c0_4] : memref<1x1x128xf32, #tpu.memory_space<vmem>>, vector<1x1x128xf32>
    %3 = vector.shape_cast %2 : vector<1x1x128xf32> to vector<1x128xf32>
    %cst = arith.constant 4.188790e-03 : f32
    %4 = vector.broadcast %cst : f32 to vector<1x128xf32>
    %5 = arith.mulf %1, %4 : vector<1x128xf32>
    %6 = math.sin %5 : vector<1x128xf32>
    %7 = math.cos %5 : vector<1x128xf32>
    %8 = arith.mulf %6, %7 : vector<1x128xf32>
    %9 = arith.mulf %7, %6 : vector<1x128xf32>
    %10 = arith.addf %8, %9 : vector<1x128xf32>
    %11 = arith.mulf %7, %7 : vector<1x128xf32>
    %12 = arith.mulf %6, %6 : vector<1x128xf32>
    %13 = arith.subf %11, %12 : vector<1x128xf32>
    %14 = arith.mulf %10, %7 : vector<1x128xf32>
    %15 = arith.mulf %13, %6 : vector<1x128xf32>
    %16 = arith.addf %14, %15 : vector<1x128xf32>
    %17 = arith.mulf %13, %7 : vector<1x128xf32>
    %18 = arith.mulf %10, %6 : vector<1x128xf32>
    %19 = arith.subf %17, %18 : vector<1x128xf32>
    %20 = arith.mulf %16, %7 : vector<1x128xf32>
    %21 = arith.mulf %19, %6 : vector<1x128xf32>
    %22 = arith.addf %20, %21 : vector<1x128xf32>
    %23 = arith.mulf %19, %7 : vector<1x128xf32>
    %24 = arith.mulf %16, %6 : vector<1x128xf32>
    %25 = arith.subf %23, %24 : vector<1x128xf32>
    %26 = arith.mulf %22, %7 : vector<1x128xf32>
    %27 = arith.mulf %25, %6 : vector<1x128xf32>
    %28 = arith.addf %26, %27 : vector<1x128xf32>
    %29 = arith.mulf %25, %7 : vector<1x128xf32>
    %30 = arith.mulf %22, %6 : vector<1x128xf32>
    %31 = arith.subf %29, %30 : vector<1x128xf32>
    %32 = arith.mulf %28, %7 : vector<1x128xf32>
    %33 = arith.mulf %31, %6 : vector<1x128xf32>
    %34 = arith.addf %32, %33 : vector<1x128xf32>
    %35 = arith.mulf %31, %7 : vector<1x128xf32>
    %36 = arith.mulf %28, %6 : vector<1x128xf32>
    %37 = arith.subf %35, %36 : vector<1x128xf32>
    %38 = arith.mulf %34, %7 : vector<1x128xf32>
    %39 = arith.mulf %37, %6 : vector<1x128xf32>
    %40 = arith.addf %38, %39 : vector<1x128xf32>
    %41 = arith.mulf %37, %7 : vector<1x128xf32>
    %42 = arith.mulf %34, %6 : vector<1x128xf32>
    %43 = arith.subf %41, %42 : vector<1x128xf32>
    %44 = arith.mulf %40, %7 : vector<1x128xf32>
    %45 = arith.mulf %43, %6 : vector<1x128xf32>
    %46 = arith.addf %44, %45 : vector<1x128xf32>
    %47 = arith.mulf %43, %7 : vector<1x128xf32>
    %48 = arith.mulf %40, %6 : vector<1x128xf32>
    %49 = arith.subf %47, %48 : vector<1x128xf32>
    %50 = arith.mulf %46, %7 : vector<1x128xf32>
    %51 = arith.mulf %49, %6 : vector<1x128xf32>
    %52 = arith.addf %50, %51 : vector<1x128xf32>
    %53 = arith.mulf %49, %7 : vector<1x128xf32>
    %54 = arith.mulf %46, %6 : vector<1x128xf32>
    %55 = arith.subf %53, %54 : vector<1x128xf32>
    %56 = arith.mulf %52, %7 : vector<1x128xf32>
    %57 = arith.mulf %55, %6 : vector<1x128xf32>
    %58 = arith.addf %56, %57 : vector<1x128xf32>
    %59 = arith.mulf %55, %7 : vector<1x128xf32>
    %60 = arith.mulf %52, %6 : vector<1x128xf32>
    %61 = arith.subf %59, %60 : vector<1x128xf32>
    %62 = arith.mulf %58, %7 : vector<1x128xf32>
    %63 = arith.mulf %61, %6 : vector<1x128xf32>
    %64 = arith.addf %62, %63 : vector<1x128xf32>
    %65 = arith.mulf %61, %7 : vector<1x128xf32>
    %66 = arith.mulf %58, %6 : vector<1x128xf32>
    %67 = arith.subf %65, %66 : vector<1x128xf32>
    %68 = arith.mulf %64, %7 : vector<1x128xf32>
    %69 = arith.mulf %67, %6 : vector<1x128xf32>
    %70 = arith.addf %68, %69 : vector<1x128xf32>
    %71 = arith.mulf %67, %7 : vector<1x128xf32>
    %72 = arith.mulf %64, %6 : vector<1x128xf32>
    %73 = arith.subf %71, %72 : vector<1x128xf32>
    %74 = arith.mulf %70, %7 : vector<1x128xf32>
    %75 = arith.mulf %73, %6 : vector<1x128xf32>
    %76 = arith.addf %74, %75 : vector<1x128xf32>
    %77 = arith.mulf %73, %7 : vector<1x128xf32>
    %78 = arith.mulf %70, %6 : vector<1x128xf32>
    %79 = arith.subf %77, %78 : vector<1x128xf32>
    %80 = arith.mulf %76, %7 : vector<1x128xf32>
    %81 = arith.mulf %79, %6 : vector<1x128xf32>
    %82 = arith.addf %80, %81 : vector<1x128xf32>
    %83 = arith.mulf %79, %7 : vector<1x128xf32>
    %84 = arith.mulf %76, %6 : vector<1x128xf32>
    %85 = arith.subf %83, %84 : vector<1x128xf32>
    %86 = arith.mulf %82, %7 : vector<1x128xf32>
    %87 = arith.mulf %85, %6 : vector<1x128xf32>
    %88 = arith.addf %86, %87 : vector<1x128xf32>
    %89 = arith.mulf %85, %7 : vector<1x128xf32>
    %90 = arith.mulf %82, %6 : vector<1x128xf32>
    %91 = arith.subf %89, %90 : vector<1x128xf32>
    %92 = arith.mulf %88, %7 : vector<1x128xf32>
    %93 = arith.mulf %91, %6 : vector<1x128xf32>
    %94 = arith.addf %92, %93 : vector<1x128xf32>
    %95 = arith.mulf %91, %7 : vector<1x128xf32>
    %96 = arith.mulf %88, %6 : vector<1x128xf32>
    %97 = arith.subf %95, %96 : vector<1x128xf32>
    %98 = tpu.concatenate %6, %10, %16, %22, %28, %34, %40, %46, %52, %58, %64, %70, %76, %82, %88, %94 in 0 : vector<1x128xf32>, vector<1x128xf32>, vector<1x128xf32>, vector<1x128xf32>, vector<1x128xf32>, vector<1x128xf32>, vector<1x128xf32>, vector<1x128xf32>, vector<1x128xf32>, vector<1x128xf32>, vector<1x128xf32>, vector<1x128xf32>, vector<1x128xf32>, vector<1x128xf32>, vector<1x128xf32>, vector<1x128xf32> -> vector<16x128xf32>
    %99 = tpu.concatenate %7, %13, %19, %25, %31, %37, %43, %49, %55, %61, %67, %73, %79, %85, %91, %97 in 0 : vector<1x128xf32>, vector<1x128xf32>, vector<1x128xf32>, vector<1x128xf32>, vector<1x128xf32>, vector<1x128xf32>, vector<1x128xf32>, vector<1x128xf32>, vector<1x128xf32>, vector<1x128xf32>, vector<1x128xf32>, vector<1x128xf32>, vector<1x128xf32>, vector<1x128xf32>, vector<1x128xf32>, vector<1x128xf32> -> vector<16x128xf32>
    %100 = tpu.concatenate %98, %99 in 0 : vector<16x128xf32>, vector<16x128xf32> -> vector<32x128xf32>
    %c0_5 = arith.constant 0 : index
    %c0_6 = arith.constant 0 : index
    %c0_7 = arith.constant 0 : index
    %101 = vector.load %arg4[%c0_5, %c0_6, %c0_7] : memref<1x64x32xbf16, #tpu.memory_space<vmem>>, vector<1x64x32xbf16>
    %102 = vector.shape_cast %101 : vector<1x64x32xbf16> to vector<64x32xbf16>
    %103 = arith.truncf %100 : vector<32x128xf32> to vector<32x128xbf16>
    %cst_8 = arith.constant dense<0.000000e+00> : vector<64x128xf32>
    %104 = tpu.matmul %102, %103, %cst_8 {dimension_numbers = #tpu.dot_dimension_numbers<[1], [0], [0], [1], [0, 0, 1, 1], [], []>} : vector<64x32xbf16>, vector<32x128xbf16>, vector<64x128xf32> -> vector<64x128xf32>
    %c0_9 = arith.constant 0 : index
    %c0_10 = arith.constant 0 : index
    %c0_11 = arith.constant 0 : index
    %105 = vector.load %arg5[%c0_9, %c0_10, %c0_11] : memref<1x64x1xf32, #tpu.memory_space<vmem>>, vector<1x64x1xf32>
    %106 = vector.shape_cast %105 : vector<1x64x1xf32> to vector<64x1xf32>
    %107 = vector.broadcast %106 : vector<64x1xf32> to vector<64x128xf32>
    %108 = arith.addf %104, %107 : vector<64x128xf32>
    %109 = vector.extract_strided_slice %108 {offsets = [0, 0], sizes = [32, 128], strides = [1, 1]} : vector<64x128xf32> to vector<32x128xf32>
    %110 = vector.extract_strided_slice %108 {offsets = [32, 0], sizes = [32, 128], strides = [1, 1]} : vector<64x128xf32> to vector<32x128xf32>
    %c0_12 = arith.constant 0 : index
    %c0_13 = arith.constant 0 : index
    %c0_14 = arith.constant 0 : index
    %111 = vector.load %arg6[%c0_12, %c0_13, %c0_14] : memref<1x32x1xf32, #tpu.memory_space<vmem>>, vector<1x32x1xf32>
    %112 = vector.shape_cast %111 : vector<1x32x1xf32> to vector<32x1xf32>
    %113 = vector.broadcast %112 : vector<32x1xf32> to vector<32x128xf32>
    %114 = vector.broadcast %3 : vector<1x128xf32> to vector<32x128xf32>
    %115 = arith.mulf %113, %114 : vector<32x128xf32>
    %116 = arith.mulf %109, %115 : vector<32x128xf32>
    %117 = arith.addf %116, %110 : vector<32x128xf32>
    %c0_15 = arith.constant 0 : index
    %c0_16 = arith.constant 0 : index
    %c0_17 = arith.constant 0 : index
    %118 = vector.load %arg7[%c0_15, %c0_16, %c0_17] : memref<1x32x128xf32, #tpu.memory_space<vmem>>, vector<1x32x128xf32>
    %119 = vector.shape_cast %118 : vector<1x32x128xf32> to vector<32x128xf32>
    %120 = vector.shape_cast %117 : vector<32x128xf32> to vector<1x32x128xf32>
    tpu.vector_store %arg7[%c0_15, %c0_16, %c0_17], %120 {strides = array<i32>} : memref<1x32x128xf32, #tpu.memory_space<vmem>>, vector<1x32x128xf32>,
    return
  }
  func.func @transform_0(%arg0: i32, %arg1: i32) -> (i32, i32, i32) {
    %c0_i32 = arith.constant 0 : i32
    %c0_i32_0 = arith.constant 0 : i32
    return %arg0, %c0_i32, %arg1 : i32, i32, i32
  }
  func.func @transform_1(%arg0: i32, %arg1: i32) -> (i32, i32, i32) {
    %c0_i32 = arith.constant 0 : i32
    %c0_i32_0 = arith.constant 0 : i32
    return %arg0, %c0_i32, %arg1 : i32, i32, i32
  }
  func.func @transform_2(%arg0: i32, %arg1: i32) -> (i32, i32, i32) {
    %c0_i32 = arith.constant 0 : i32
    %c0_i32_0 = arith.constant 0 : i32
    %c0_i32_1 = arith.constant 0 : i32
    return %arg0, %c0_i32, %c0_i32_0 : i32, i32, i32
  }
  func.func @transform_3(%arg0: i32, %arg1: i32) -> (i32, i32, i32) {
    %c0_i32 = arith.constant 0 : i32
    %c0_i32_0 = arith.constant 0 : i32
    %c0_i32_1 = arith.constant 0 : i32
    return %arg0, %c0_i32, %c0_i32_0 : i32, i32, i32
  }
  func.func @transform_4(%arg0: i32, %arg1: i32) -> (i32, i32, i32) {
    %c0_i32 = arith.constant 0 : i32
    %c0_i32_0 = arith.constant 0 : i32
    %c0_i32_1 = arith.constant 0 : i32
    return %arg0, %c0_i32, %c0_i32_0 : i32, i32, i32
  }
  func.func @transform_5(%arg0: i32, %arg1: i32) -> (i32, i32, i32) {
    %c0_i32 = arith.constant 0 : i32
    %c0_i32_0 = arith.constant 0 : i32
    return %arg0, %c0_i32, %arg1 : i32, i32, i32
  }
}

</mosaic_0001>

<bundles_post_ra>
// kernel: tpu_custom_call.1
= control target key start
LH: loop header
LB: loop body
LE: loop exit
PB: predicated region body
PF: predicated region fallthrough
CT: control target
= control target key end

     0   :  { %10 = vsyncpa [#allocation3], 0  ;;  %s1791_s0 = inlined_call_operand.vmem [shape: f32[2,1,128], index: 0, kind: input, shape index: {}]   ;;  %s1792_s1 = inlined_call_operand.vmem [shape: f32[2,1,128], index: 1, kind: input, shape index: {}]   ;;  %s1793_s2 = inlined_call_operand.vmem [shape: bf16[2,64,32], index: 2, kind: input, shape index: {}]   ;;  %s1794_s3 = inlined_call_operand.vmem [shape: f32[2,64,1], index: 3, kind: input, shape index: {}]   ;;  %s1795_s4 = inlined_call_operand.vmem [shape: f32[2,32,1], index: 4, kind: input, shape index: {}]   ;;  %s1796_s5 = inlined_call_operand.hbm [shape: f32[2,32,128], index: 5, kind: output, shape index: {}]  }
   0x1   :  { %12 = vsyncpa [#allocation3 + $0x1], 0  ;;  %s1423_s18 = smov 0   ;;  %s1425_s19 = smov 0  }
   0x2   :  { %s1427_s20 = smov 0   ;;  %s1429_s21 = smov 0  }
   0x3   :  { %s1431_s22 = smov 0   ;;  %s1433_s23 = smov 0  }
   0x4 LB: > { %s1167_s24 = sadd.s32 4294967295, %s1381_s23   ;;  %s1168_s25 = sadd.s32 4294967294, %s1381_s23   ;;  %s1381_s23 = sphi %s1433_s23, %s18_s23   ;;  %s1377_s22 = sphi %s1431_s22, %s1803_s22   ;;  %s1373_s21 = sphi %s1429_s21, %s1802_s21   ;;  %s1369_s20 = sphi %s1427_s20, %s1801_s20   ;;  %s1365_s19 = sphi %s1425_s19, %s1800_s19   ;;  %s1361_s18 = sphi %s1423_s18, %s1799_s18  }
   0x5   : > { %s30_s26 = sadd.s32 1, %s1377_s22  ;;  %s173_s27 = sadd.s32 1, %s1369_s20 }
   0x6   : > { %p32_p0 = scmp.ge.s32.totalorder %s30_s26, 2  ;;  %p183_p1 = scmp.ne.s32.totalorder %s1369_s20, %s1365_s19 }
   0x7   : > { %p184_p2 = scmp.eq.s32.totalorder %s1167_s24, 1  ;;  %p189_p3 = scmp.ne.s32.totalorder %s1365_s19, %s1361_s18 }
   0x8   : > { %s1805_s26 = smov (%p32_p0, %s30_s26), 0  ;;  %p190_p5 = scmp.eq.s32.totalorder %s1168_s25, 1 }
   0x9   : > { %p1463_p4 = por %p184_p2, %p183_p1  ;;  %s168_s29 = ssub.s32 %s1377_s22, %s1805_s26 }
   0xa   : > { %p1171_p6 = scmp.ge.s32.totalorder %s1381_s23, 1  ;;  %p171_p7 = scmp.eq.s32.totalorder %s168_s29, 0 }
   0xb   : > { %p1470_p8 = por %p190_p5, %p189_p3  ;;  %p250_p9 = scmp.lt.s32.totalorder %s1381_s23, 3 }
   0xc   : > { %s1476_s6 = scalar_select %p171_p7, %s1369_s20, %s173_s27  }
   0xd   : > { %p251_p10 = pnand %p1171_p6, %p250_p9 }
   0xe   : > { %p300_p11 = scmp.lt.s32.totalorder (!%p251_p10), %s1373_s21, 1  ;;  %s1390_s25 = smov (!%p251_p10), [#allocation2]  }
   0xf   : > { %254 = sbr.rel (%p251_p10) target bundleno = 401 (0x191), region = 40  ;;  %s1309_s27 = sshll.u32 (!%p251_p10), %s1390_s25, 4  ;;  %s1310_s27 = int_to_ptr.vmem [resolvable:$false] %s1309_s27 }
  0x14   : > { %s1480_s7 = scalar_select %p300_p11, %s1373_s21, 1  ;;  %v1383_v13 = vmov 683565275   ;;  %v1384_v15 = vmov 2475754826   ;;  %vm908_vm6 = vcmask 261120  }
  0x15   : > { %v1385_v17 = vmov 2131351028   ;;  %v1386_v19 = vmov 2102212464   ;;  %v1387_v21 = vmov 920167782  }
  0x16   : > { %s311_s10 = scalar_lea.vmem %s1792_s1, %s1480_s7  ;;  %v1388_v28 = vmov 1326507024   ;;  %s1201_s11 = sshll.u32 %s1480_s7, 5  ;;  %v1389_v59 = vmov 0  }
  0x17   : > { %v328_v0 = vld [vmem:[%s311_s10] sm:$0x1]  ;;  %s1504_s14 = scalar_lea.vmem %s1793_s2, %s1201_s11  ;;  %1296 = vset.pattern.permute.xlu1 %v1389_v59  ;;  %1295 = vset.pattern.permute.xlu0 %v1389_v59  ;;  %s1202_s15 = sshll.u32 %s1480_s7, 6 }
  0x18   : > { %v1486_v1 = vmul.f32 0.00418879, %v328_v0  ;;  %v1297_v54 = vld [vmem:[%s1504_s14] sm:$0xff]   ;;  %v1298_v56 = vld [vmem:[%s1504_s14 + $0x10] sm:$0xff]   ;;  %s1515_s24 = scalar_lea.vmem %s1794_s3, %s1202_s15  ;;  %s326_s29 = scalar_lea.vmem %s1795_s4, %s1201_s11 }
  0x19   : > { %1215 = vmatprep.mubr.msk.bf16.mxu0 %vm908_vm6, %v1297_v54  ;;  %1219 = vmatprep.mubr.msk.bf16.mxu1 %vm908_vm6, %v1298_v56  ;;  %v842_v61 = vld [vmem:[%s1515_s24 + $0x10] sm:$0xff]  ;;  %v840_v62 = vld [vmem:[%s1515_s24] sm:$0xff]  ;;  %v843_v0 = vld [vmem:[%s1515_s24 + $0x18] sm:$0xff]  ;;  %s305_s10 = scalar_lea.vmem %s1791_s0, %s1480_s7  ;;  %s297_s11 = sand.u32 1, %s1365_s19  }
  0x1a   : > { %v334_v2 = vand.u32 2139095040, %v1486_v1  ;;  %v331_v4 = vand.u32 2147483647, %v1486_v1  ;;  %860 = vperm.xlu1 %1296, %v842_v61   ;;  %850 = vperm.xlu0 %1295, %v840_v62   ;;  %vm333_vm8 = vcmp.lt.s32.totalorder %v1486_v1, 0  ;;  %s1172_s12 = sshll.u32 %s297_s11, 5 }
  0x1b   : > { %s299_s7 = scalar_lea.vmem [#allocation2], %s1172_s12 }
  0x1c   : > { %v335_v3 = vshrl.u32 %v334_v2, 23  ;;  %v338_v7 = vand.u32 8388607, %v331_v4  ;;  %v841_v2 = vld [vmem:[%s1515_s24 + $0x8] sm:$0xff]  ;;  %vm332_vm9 = vcmp.le.f32.partialorder %v331_v4, 0.7853982 }
  0x1d   : > { %s1047_s13 = sshll.u32 %s299_s7, 4  ;;  %s1737_s13 = int_to_ptr.vmem [resolvable:$true] %s1047_s13 }
  0x1e   : > { %v1179_v5 = vadd.s32 4294967169, %v335_v3  ;;  %v339_v10 = vor.u32 8388608, %v338_v7  ;;  %865 = vperm.xlu1 %1296, %v843_v0   ;;  %855 = vperm.xlu0 %1295, %v841_v2   ;;  %v986_v7 = vld [vmem:[%s326_s29] sm:$0xff]  ;;  %p1312_p1 = scmp.lt.s32.totalorder %s1737_s13, %s1310_s27 }
  0x20   : > { %v341_v6 = vadd.s32 1, %v1179_v5  ;;  %v379_v30 = vshll.u32 %v339_v10, 8  ;;  %v989_v10 = vld [vmem:[%s326_s29 + $0x18] sm:$0xff] }
  0x22   : > { %vm342_vm0 = vcmp.gt.s32.totalorder %v341_v6, 0  ;;  %992 = vperm.xlu0 %1295, %v986_v7  }
  0x23   : > { %v343_v8 = vsel %vm342_vm0, %v341_v6, 0  ;;  %v987_v6 = vld [vmem:[%s326_s29 + $0x8] sm:$0xff]  ;;  %vm423_vm0 = vweird.f32 %v1486_v1 }
  0x24   : > { %v345_v9 = vand.u32 31, %v343_v8  ;;  %v344_v11 = vshrl.u32 %v343_v8, 5  ;;  %997 = vperm.xlu1 %1296, %v987_v6  }
  0x26   : > { %v346_v12 = vsub.s32 32, %v345_v9  ;;  %v348_v14 = vshll.u32 %v1383_v13, %v345_v9  ;;  %v351_v16 = vshll.u32 %v1384_v15, %v345_v9  ;;  %v354_v18 = vshll.u32 %v1385_v17, %v345_v9 }
  0x27   : > { %v357_v20 = vshll.u32 %v1386_v19, %v345_v9  ;;  %v360_v22 = vshll.u32 %v1387_v21, %v345_v9  ;;  %vm363_vm1 = vcmp.lt.s32.totalorder %v344_v11, 1  ;;  %vm366_vm2 = vcmp.lt.s32.totalorder %v344_v11, 4 }
  0x28   : > { %v347_v23 = vshrl.u32 %v1383_v13, %v346_v12  ;;  %v349_v24 = vshrl.u32 %v1384_v15, %v346_v12  ;;  %v352_v25 = vshrl.u32 %v1385_v17, %v346_v12  ;;  %v355_v26 = vshrl.u32 %v1386_v19, %v346_v12  ;;  %1007 = vperm.xlu1 %1296, %v989_v10   ;;  %v844_v15 = vld [vmem:[%s1515_s24 + $0x20] sm:$0xff] }
  0x29   : > { %v358_v27 = vshrl.u32 %v1387_v21, %v346_v12  ;;  %v361_v29 = vshrl.u32 %v1388_v28, %v346_v12  ;;  %vm364_vm3 = vcmp.lt.s32.totalorder %v344_v11, 2  ;;  %vm365_vm4 = vcmp.lt.s32.totalorder %v344_v11, 3  ;;  %v988_v11 = vld [vmem:[%s326_s29 + $0x10] sm:$0xff]  ;;  %s1311_s29 = scalar_lea.vmem %s1310_s27, 1024 }
  0x2a   : > { %v350_v31 = vor.u32 %v349_v24, %v348_v14  ;;  %v353_v32 = vor.u32 %v352_v25, %v351_v16  ;;  %v356_v33 = vor.u32 %v355_v26, %v354_v18  ;;  %1002 = vperm.xlu0 %1295, %v988_v11   ;;  %v845_v14 = vld [vmem:[%s1515_s24 + $0x28] sm:$0xff] }
  0x2b   : > { %v359_v34 = vor.u32 %v358_v27, %v357_v20  ;;  %v362_v35 = vor.u32 %v361_v29, %v360_v22  ;;  %v847_v22 = vld [vmem:[%s1515_s24 + $0x38] sm:$0xff] }
  0x2c   : > { %v367_v36 = vsel %vm363_vm1, %v347_v23, %v350_v31  ;;  %v368_v37 = vsel %vm366_vm2, %v356_v33, 2102212464  ;;  %v371_v38 = vsel %vm363_vm1, %v350_v31, %v353_v32  ;;  %v375_v39 = vsel %vm363_vm1, %v353_v32, %v356_v33  ;;  %875 = vperm.xlu1 %1296, %v845_v14   ;;  %v846_v23 = vld [vmem:[%s1515_s24 + $0x30] sm:$0xff]  ;;  %s1746_s24 = scalar_lea.sflag [#allocation3], %s297_s11 }
  0x2d   : > { %v369_v40 = vsel %vm365_vm4, %v353_v32, %v368_v37  ;;  %v372_v41 = vsel %vm366_vm2, %v359_v34, 920167782  ;;  %v376_v42 = vsel %vm366_vm2, %v362_v35, 1326507024  ;;  %vm711_vm1 = vcmask 1040384  }
  0x2e   : > { %v373_v43 = vsel %vm365_vm4, %v356_v33, %v372_v41  ;;  %v377_v44 = vsel %vm365_vm4, %v359_v34, %v376_v42  ;;  %v370_v45 = vsel %vm364_vm3, %v367_v36, %v369_v40  ;;  %870 = vperm.xlu0 %1295, %v844_v15   ;;  %vm713_vm2 = vcmask 1041408  }
  0x2f   : > { %v374_v46 = vsel %vm364_vm3, %v371_v38, %v373_v43  ;;  %v378_v47 = vsel %vm364_vm3, %v375_v39, %v377_v44  ;;  %v386_v52 = vmul.u32 %v379_v30, %v370_v45  ;;  %vm715_vm3 = vcmask 1042432  }
  0x30   : > { %v1492_v48 = vmul.u32.u64.low %v379_v30, %v378_v47  ;;  %v1493_v49 = vmul.u32.u64.high %v379_v30, %v378_v47, %v1492_v48  ;;  %v1495_v50 = vmul.u32.u64.low %v379_v30, %v374_v46  ;;  %v1496_v51 = vmul.u32.u64.high %v379_v30, %v374_v46, %v1495_v50  ;;  %885 = vperm.xlu1 %1296, %v847_v22  }
  0x31   : > { %vm717_vm4 = vcmask 1043456  }
  0x32   : > { %vm388_vm5 = vc.u32 %v1493_v49, %v1495_v50  ;;  %v389_v53 = vadd.s32 1, %v1496_v51  ;;  %v387_v13 = vadd.s32 %v1495_v50, %v1493_v49  ;;  %880 = vperm.xlu0 %1295, %v846_v23  }
  0x34   : > { %v390_v55 = vsel %vm388_vm5, %v389_v53, %v1496_v51  ;;  %vm719_vm5 = vcmask 1044480  }
  0x35   : > { %v391_v57 = vadd.s32 %v390_v55, %v386_v52 }
  0x37   : > { %v392_v58 = vadd.s32 536870912, %v391_v57 }
  0x39   : > { %v393_v60 = vshrl.u32 %v392_v58, 30 }
  0x3b   : > { %v394_v63 = vshll.u32 %v393_v60, 30  ;;  %v417_v30 = vsub.s32 4, %v393_v60 }
  0x3d   : > { %v395_v3 = vsub.s32 %v391_v57, %v394_v63  ;;  %v418_v33 = vsel %vm333_vm8, %v417_v30, %v393_v60 }
  0x3e   : > { %v420_v35 = vsel %vm332_vm9, 0, %v418_v33 }
  0x3f   : > { %v397_v5 = vsub.s32 0, %v395_v3  ;;  %v424_v36 = vadd.s32 3, %v420_v35  ;;  %v528_v38 = vand.u32 3, %v420_v35 }
  0x41   : > { %v1180_v8 = vmin.u32 %v397_v5, %v395_v3  ;;  %v425_v37 = vand.u32 3, %v424_v36  ;;  %vm533_vm11 = vcmp.eq.s32.totalorder %v528_v38, 2  ;;  %vm530_vm13 = vcmp.eq.s32.totalorder %v528_v38, 0 }
  0x42   : > { %vm529_vm15 = vcmp.lt.s32.totalorder %v528_v38, 2 }
  0x43   : > { %v399_v9 = vclz %v1180_v8  ;;  %vm430_vm10 = vcmp.eq.s32.totalorder %v425_v37, 2  ;;  %vm427_vm12 = vcmp.eq.s32.totalorder %v425_v37, 0  ;;  %vm426_vm14 = vcmp.lt.s32.totalorder %v425_v37, 2 }
  0x45   : > { %v1181_v12 = vadd.s32 4294967294, %v399_v9 }
  0x47   : > { %vm1182_vm7 = vcmp.lt.s32.totalorder %v1181_v12, 0 }
  0x48   : > { %v402_v16 = vsel %vm1182_vm7, 0, %v1181_v12  ;;  %vm721_vm7 = vcmask 1045504  }
  0x49   : > { %v403_v17 = vsub.s32 32, %v402_v16  ;;  %v404_v18 = vshll.u32 %v395_v3, %v402_v16  ;;  %v407_v19 = vsub.s32 4294967266, %v402_v16  ;;  %v628_v16 = vlaneseq }
  0x4b   : > { %v405_v20 = vshrl.u32 %v387_v13, %v403_v17  ;;  %v408_v21 = vadd.s32 127, %v407_v19  ;;  %v629_v23 = vshrl.u32 %v628_v16, 7 }
  0x4d   : > { %v406_v24 = vor.u32 %v405_v20, %v404_v18  ;;  %v409_v25 = vshll.u32 %v408_v21, 23  ;;  %v1616_v30 = vsub.s32 0, %v629_v23 }
  0x4f   : > { %v410_v26 = vor.u32 4788187, %v409_v25  ;;  %v413_v27 = vcvt.s32.f32 %v406_v24 }
  0x51   : > { %v411_v28 = vand.u32 2147483647, %v410_v26 }
  0x53   : > { %v414_v29 = vmul.f32 %v413_v27, %v411_v28 }
  0x55   : > { %v415_v31 = vxor.u32 2147483648, %v414_v29 }
  0x57   : > { %v416_v32 = vsel %vm333_vm8, %v415_v31, %v414_v29  ;;  %vm723_vm8 = vcmask 1046528  }
  0x58   : > { %v419_v34 = vsel %vm332_vm9, %v1486_v1, %v416_v32 }
  0x59   : > { %1301 = vcosq.f32 %v419_v34 }
  0x5a   : > { %1303 = vsinq.f32 %v419_v34 }
  0x66   : > { %v1302_v39 = vpop.eup %1301 }
  0x67   : > { %v1304_v40 = vpop.eup %1303  ;;  %v431_v41 = vxor.u32 2147483648, %v1302_v39 }
  0x68   : > { %v428_v4 = vxor.u32 2147483648, %v1304_v40 }
  0x69   : > { %v432_v42 = vsel %vm430_vm10, %v431_v41, %v1304_v40  ;;  %v535_v43 = vsel %vm533_vm11, %v431_v41, %v1304_v40 }
  0x6a   : > { %v429_v44 = vsel %vm427_vm12, %v1302_v39, %v428_v4  ;;  %v532_v45 = vsel %vm530_vm13, %v1302_v39, %v428_v4 }
  0x6b   : > { %v433_v46 = vsel %vm426_vm14, %v429_v44, %v432_v42  ;;  %v536_v47 = vsel %vm529_vm15, %v532_v45, %v535_v43 }
  0x6c   : > { %v1534_v48 = vsel %vm423_vm0, nan, %v433_v46  ;;  %v1536_v49 = vsel %vm423_vm0, nan, %v536_v47 }
  0x6d   : > { %v538_v50 = vmul.f32 %v1536_v49, %v1534_v48  ;;  %v540_v51 = vmul.f32 %v1536_v49, %v1536_v49  ;;  %v541_v52 = vmul.f32 %v1534_v48, %v1534_v48 }
  0x6f   : > { %v1544_v1 = vadd.f32 %v538_v50, %v538_v50  ;;  %v542_v53 = vsub.f32 %v540_v51, %v541_v52 }
  0x71   : > { %v543_v54 = vmul.f32 %v1544_v1, %v1536_v49  ;;  %v544_v55 = vmul.f32 %v542_v53, %v1534_v48  ;;  %v546_v56 = vmul.f32 %v542_v53, %v1536_v49  ;;  %v547_v57 = vmul.f32 %v1544_v1, %v1534_v48 }
  0x72   : > { %v736_v37 = vrot.slane %v542_v53, %v1616_v30  ;;  %v631_v43 = vrot.slane %v1544_v1, %v1616_v30 }
  0x73   : > { %v1552_v58 = vadd.f32 %v544_v55, %v543_v54  ;;  %v1554_v59 = vsub.f32 %v546_v56, %v547_v57 }
  0x74   : > { %v816_v45 = vsel %vm711_vm1, %v1536_v49, %v736_v37  ;;  %v712_v55 = vsel %vm711_vm1, %v1534_v48, %v631_v43 }
  0x75   : > { %v549_v60 = vmul.f32 %v1552_v58, %v1536_v49  ;;  %v550_v61 = vmul.f32 %v1554_v59, %v1534_v48  ;;  %v552_v62 = vmul.f32 %v1554_v59, %v1536_v49  ;;  %v553_v63 = vmul.f32 %v1552_v58, %v1534_v48 }
  0x76   : > { %v742_v44 = vrot.slane %v1554_v59, %v1616_v30  ;;  %v637_v1 = vrot.slane %v1552_v58, %v1616_v30 }
  0x77   : > { %v1564_v0 = vadd.f32 %v550_v61, %v549_v60  ;;  %v1566_v2 = vsub.f32 %v552_v62, %v553_v63 }
  0x78   : > { %v817_v57 = vsel %vm713_vm2, %v816_v45, %v742_v44 }
  0x79   : > { %v555_v3 = vmul.f32 %v1564_v0, %v1536_v49  ;;  %v556_v5 = vmul.f32 %v1566_v2, %v1534_v48  ;;  %v558_v6 = vmul.f32 %v1566_v2, %v1536_v49  ;;  %v559_v7 = vmul.f32 %v1564_v0, %v1534_v48 }
  0x7a   : > { %v748_v56 = vrot.slane %v1566_v2, %v1616_v30 }
  0x7b   : > { %v1576_v8 = vadd.f32 %v556_v5, %v555_v3  ;;  %v1578_v9 = vsub.f32 %v558_v6, %v559_v7  ;;  %v714_v5 = vsel %vm713_vm2, %v712_v55, %v637_v1 }
  0x7d   : > { %v561_v10 = vmul.f32 %v1576_v8, %v1536_v49  ;;  %v562_v11 = vmul.f32 %v1578_v9, %v1534_v48  ;;  %v564_v12 = vmul.f32 %v1578_v9, %v1536_v49  ;;  %v565_v13 = vmul.f32 %v1576_v8, %v1534_v48 }
  0x7e   : > { %v754_v7 = vrot.slane %v1578_v9, %v1616_v30 }
  0x7f   : > { %v1588_v14 = vadd.f32 %v562_v11, %v561_v10  ;;  %v1590_v15 = vsub.f32 %v564_v12, %v565_v13  ;;  %v643_v10 = vrot.slane %v1564_v0, %v1616_v30  ;;  %v818_v11 = vsel %vm715_vm3, %v817_v57, %v748_v56 }
  0x80   : > { %v649_v0 = vrot.slane %v1576_v8, %v1616_v30 }
  0x81   : > { %v567_v17 = vmul.f32 %v1588_v14, %v1536_v49  ;;  %v568_v18 = vmul.f32 %v1590_v15, %v1534_v48  ;;  %v570_v19 = vmul.f32 %v1590_v15, %v1536_v49  ;;  %v571_v20 = vmul.f32 %v1588_v14, %v1534_v48 }
  0x83   : > { %v1600_v21 = vadd.f32 %v568_v18, %v567_v17  ;;  %v1602_v22 = vsub.f32 %v570_v19, %v571_v20 }
  0x85   : > { %v573_v24 = vmul.f32 %v1600_v21, %v1536_v49  ;;  %v574_v25 = vmul.f32 %v1602_v22, %v1534_v48  ;;  %v576_v26 = vmul.f32 %v1602_v22, %v1536_v49  ;;  %v577_v27 = vmul.f32 %v1600_v21, %v1534_v48 }
  0x86   : > { %v661_v1 = vrot.slane %v1600_v21, %v1616_v30 }
  0x87   : > { %v1612_v28 = vadd.f32 %v574_v25, %v573_v24  ;;  %v1614_v29 = vsub.f32 %v576_v26, %v577_v27  ;;  %v819_v25 = vsel %vm717_vm4, %v818_v11, %v754_v7  ;;  %v716_v26 = vsel %vm715_vm3, %v714_v5, %v643_v10 }
  0x88   : > { %v760_v27 = vrot.slane %v1590_v15, %v1616_v30 }
  0x89   : > { %v579_v31 = vmul.f32 %v1612_v28, %v1536_v49  ;;  %v580_v32 = vmul.f32 %v1614_v29, %v1534_v48  ;;  %v582_v33 = vmul.f32 %v1614_v29, %v1536_v49  ;;  %v583_v34 = vmul.f32 %v1612_v28, %v1534_v48 }
  0x8b   : > { %v581_v35 = vadd.f32 %v580_v32, %v579_v31  ;;  %v584_v36 = vsub.f32 %v582_v33, %v583_v34 }
  0x8d   : > { %v585_v38 = vmul.f32 %v581_v35, %v1536_v49  ;;  %v586_v39 = vmul.f32 %v584_v36, %v1534_v48  ;;  %v588_v40 = vmul.f32 %v584_v36, %v1536_v49  ;;  %v589_v41 = vmul.f32 %v581_v35, %v1534_v48 }
  0x8f   : > { %v587_v4 = vadd.f32 %v586_v39, %v585_v38  ;;  %v590_v42 = vsub.f32 %v588_v40, %v589_v41  ;;  %v718_v38 = vsel %vm717_vm4, %v716_v26, %v649_v0  ;;  %v655_v40 = vrot.slane %v1588_v14, %v1616_v30 }
  0x91   : > { %v591_v46 = vmul.f32 %v587_v4, %v1536_v49  ;;  %v592_v47 = vmul.f32 %v590_v42, %v1534_v48  ;;  %v594_v50 = vmul.f32 %v590_v42, %v1536_v49  ;;  %v595_v51 = vmul.f32 %v587_v4, %v1534_v48 }
  0x92   : > { %v778_v52 = vrot.slane %v590_v42, %v1616_v30  ;;  %v673_v60 = vrot.slane %v587_v4, %v1616_v30  ;;  %v766_v4 = vrot.slane %v1602_v22, %v1616_v30  ;;  %v820_v42 = vsel %vm719_vm5, %v819_v25, %v760_v27  ;;  %v1195_v27 = vld [vmem:[%s305_s10] ss:$0 sm:$0xff] }
  0x93   : > { %v593_v53 = vadd.f32 %v592_v47, %v591_v46  ;;  %v596_v54 = vsub.f32 %v594_v50, %v595_v51  ;;  %v720_v57 = vsel %vm719_vm5, %v718_v38, %v655_v40 }
  0x94   : > { %v823_v59 = vsel %vm711_vm1, %v584_v36, %v778_v52  ;;  %v725_v16 = vsel %vm711_vm1, %v581_v35, %v673_v60  ;;  %v821_v55 = vsel %vm721_vm7, %v820_v42, %v766_v4  ;;  %v722_v5 = vsel %vm721_vm7, %v720_v57, %v661_v1 }
  0x95   : > { %v597_v61 = vmul.f32 %v593_v53, %v1536_v49  ;;  %v598_v62 = vmul.f32 %v596_v54, %v1534_v48  ;;  %v600_v58 = vmul.f32 %v596_v54, %v1536_v49  ;;  %v601_v63 = vmul.f32 %v593_v53, %v1534_v48 }
  0x96   : > { %v784_v3 = vrot.slane %v596_v54, %v1616_v30  ;;  %v679_v13 = vrot.slane %v593_v53, %v1616_v30  ;;  %v772_v54 = vrot.slane %v1614_v29, %v1616_v30 }
  0x97   : > { %v599_v2 = vadd.f32 %v598_v62, %v597_v61  ;;  %v602_v6 = vsub.f32 %v600_v58, %v601_v63  ;;  %v667_v58 = vrot.slane %v1612_v28, %v1616_v30 }
  0x98   : > { %v824_v12 = vsel %vm713_vm2, %v823_v59, %v784_v3  ;;  %v726_v33 = vsel %vm713_vm2, %v725_v16, %v679_v13 }
  0x99   : > { %v603_v17 = vmul.f32 %v599_v2, %v1536_v49  ;;  %v604_v18 = vmul.f32 %v602_v6, %v1534_v48  ;;  %v606_v19 = vmul.f32 %v602_v6, %v1536_v49  ;;  %v607_v20 = vmul.f32 %v599_v2, %v1534_v48 }
  0x9a   : > { %v790_v9 = vrot.slane %v602_v6, %v1616_v30  ;;  %v685_v32 = vrot.slane %v599_v2, %v1616_v30  ;;  %v724_v10 = vsel %vm723_vm8, %v722_v5, %v667_v58 }
  0x9b   : > { %v605_v23 = vadd.f32 %v604_v18, %v603_v17  ;;  %v608_v24 = vsub.f32 %v606_v19, %v607_v20  ;;  %v1299_v17 = vld [vmem:[%s1504_s14 + $0x8] sm:$0xff]   ;;  %v1300_v18 = vld [vmem:[%s1504_s14 + $0x18] sm:$0xff]   ;;  %v861_v19 = vpop.permute.xlu1 %860  ;;  %s1204_s14 = sshll.u32 %s1373_s21, 9  ;;  %s1305_s21 = scalar_lea.vmem %s1737_s13, 512 }
  0x9c   : > { %v825_v31 = vsel %vm715_vm3, %v824_v12, %v790_v9  ;;  %v727_v44 = vsel %vm715_vm3, %v726_v33, %v685_v32  ;;  %s1742_s17 = scalar_lea.hbm %s1796_s5, %s1204_s14  ;;  %p1306_p12 = scmp.ne.s32.totalorder %s1737_s13, %s1305_s21 }
  0x9d   : > { %v609_v34 = vmul.f32 %v605_v23, %v1536_v49  ;;  %v610_v35 = vmul.f32 %v608_v24, %v1534_v48  ;;  %v612_v8 = vmul.f32 %v608_v24, %v1536_v49  ;;  %v613_v36 = vmul.f32 %v605_v23, %v1534_v48  ;;  %p1313_p2 = scmp.lt.s32.totalorder %s1311_s29, %s1305_s21 }
  0x9e   : > { %v796_v37 = vrot.slane %v608_v24, %v1616_v30  ;;  %v691_v41 = vrot.slane %v605_v23, %v1616_v30  ;;  %p1307_p13 = pnand %p1306_p12, %p1463_p4 }
  0x9f   : > { %v611_v15 = vadd.f32 %v610_v35, %v609_v34  ;;  %v614_v39 = vsub.f32 %v612_v8, %v613_v36  ;;  %v866_v9 = vpop.permute.xlu1 %865  ;;  %p1314_p3 = por %p1313_p2, %p1312_p1 }
  0xa0   : > { %v826_v43 = vsel %vm717_vm4, %v825_v31, %v796_v37  ;;  %v728_v53 = vsel %vm717_vm4, %v727_v44, %v691_v41  ;;  %p1308_p0 = pneg %p1307_p13 }
  0xa1   : > { %v615_v45 = vmul.f32 %v611_v15, %v1536_v49  ;;  %v616_v46 = vmul.f32 %v614_v39, %v1534_v48  ;;  %v618_v47 = vmul.f32 %v614_v39, %v1536_v49  ;;  %v619_v50 = vmul.f32 %v611_v15, %v1534_v48 }
  0xa2   : > { %v802_v14 = vrot.slane %v614_v39, %v1616_v30  ;;  %v697_v51 = vrot.slane %v611_v15, %v1616_v30  ;;  %p1315_p5 = pnand %p1314_p3, %p1308_p0 }
  0xa3   : > { %v617_v22 = vadd.f32 %v616_v46, %v615_v45  ;;  %v620_v52 = vsub.f32 %v618_v47, %v619_v50  ;;  %v998_v23 = vpop.permute.xlu1 %997 }
  0xa4   : > { %v827_v56 = vsel %vm719_vm5, %v826_v43, %v802_v14  ;;  %v729_v63 = vsel %vm719_vm5, %v728_v53, %v697_v51  ;;  %v1017_v50 = vmul.f32 %v1195_v27, %v998_v23 }
  0xa5   : > { %v624_v59 = vmul.f32 %v620_v52, %v1536_v49  ;;  %v625_v60 = vmul.f32 %v617_v22, %v1534_v48  ;;  %v808_v61 = vrot.slane %v620_v52, %v1616_v30  ;;  %v621_v62 = vmul.f32 %v617_v22, %v1536_v49 }
  0xa6   : > { %v622_v21 = vmul.f32 %v620_v52, %v1534_v48  ;;  %v703_v29 = vrot.slane %v617_v22, %v1616_v30  ;;  %v822_v49 = vsel %vm723_vm8, %v821_v55, %v772_v54 }
  0xa7   : > { %v626_v3 = vsub.f32 %v624_v59, %v625_v60  ;;  %v828_v2 = vsel %vm721_vm7, %v827_v56, %v808_v61  ;;  %v1008_v25 = vpop.permute.xlu1 %1007 }
  0xa8   : > { %v623_v6 = vadd.f32 %v622_v21, %v621_v62  ;;  %v730_v48 = vsel %vm721_vm7, %v729_v63, %v703_v29  ;;  %v1019_v41 = vmul.f32 %v1195_v27, %v1008_v25 }
  0xa9   : > { %v814_v7 = vrot.slane %v626_v3, %v1616_v30 }
  0xaa   : > { %v709_v28 = vrot.slane %v623_v6, %v1616_v30  ;;  %v851_v30 = vpop.permute.xlu0 %850 }
  0xab   : > { %v829_v11 = vsel %vm723_vm8, %v828_v2, %v814_v7  ;;  %v876_v31 = vpop.permute.xlu1 %875 }
  0xac   : > { %v839_v12 = vpack.c.bf16 %v829_v11, %v822_v49  ;;  %v731_v13 = vsel %vm723_vm8, %v730_v48, %v709_v28 }
  0xad   : > { %v838_v16 = vpack.c.bf16 %v731_v13, %v724_v10 }
  0xae   : > { %1211 = vmatprep.subr.bf16.mxu0 %v839_v12  ;;  %1223 = vmatprep.subr.bf16.mxu1 %v839_v12  ;;  %v856_v20 = vpop.permute.xlu0 %855 }
  0xaf   : > { %1212 = vmatpush3.bf16.msra.mxu0 %v839_v12  ;;  %1225 = vmatpush3.bf16.msra.mxu1 %v839_v12  ;;  %v886_v43 = vpop.permute.xlu1 %885 }
  0xb0   : > { %1213 = vmatprep.subr.bf16.mxu0 %v838_v16  ;;  %1224 = vmatprep.subr.bf16.mxu1 %v838_v16 }
  0xb2   : > { %v993_v0 = vpop.permute.xlu0 %992 }
  0xb3   : > { %1214 = vmatpush3.bf16.msra.mxu0 %v838_v16  ;;  %1226 = vmatpush3.bf16.msra.mxu1 %v838_v16  ;;  %v1016_v38 = vmul.f32 %v1195_v27, %v993_v0 }
  0xb6   : > { %1216 = vmatmul.mubr.msk.bf16.vlgmr.msra.gmra.mxu0 %vm908_vm6, %v1299_v17  ;;  %1220 = vmatmul.mubr.msk.bf16.vlgmr.msra.gmra.mxu1 %vm908_vm6, %v1300_v18  ;;  %v1003_v24 = vpop.permute.xlu0 %1002 }
  0xb7   : > { %v1018_v34 = vmul.f32 %v1195_v27, %v1003_v24 }
  0xba   : > { %v871_v26 = vpop.permute.xlu0 %870 }
  0xbe   : > { %v881_v35 = vpop.permute.xlu0 %880 }
 0x176   : > { %v1217_v32 = vpop.f32.mrf.mxu0  ;;  %v1221_v33 = vpop.f32.mrf.mxu1 }
 0x177   : > { %v964_v8 = vadd.f32 %v1217_v32, %v861_v19  ;;  %v980_v39 = vadd.f32 %v1221_v33, %v881_v35 }
 0x178   : > { %v955_v36 = vpop.f32.mrf.mxu0  ;;  %v971_v37 = vpop.f32.mrf.mxu1 }
 0x179   : > { %v1022_v15 = vmul.f32 %v1018_v34, %v964_v8  ;;  %v956_v40 = vadd.f32 %v955_v36, %v851_v30  ;;  %v972_v46 = vadd.f32 %v971_v37, %v871_v26 }
 0x17a   : > { %v1218_v4 = vpop.f32.mrf.mxu0  ;;  %v1222_v42 = vpop.f32.mrf.mxu1 }
 0x17b   : > { %v1026_v44 = vadd.f32 %v1022_v15, %v980_v39  ;;  %v1020_v45 = vmul.f32 %v1016_v38, %v956_v40  ;;  %v967_v47 = vadd.f32 %v1218_v4, %v866_v9  ;;  %v983_v1 = vadd.f32 %v1222_v42, %v886_v43 }
 0x17c   : > { %v958_v14 = vpop.f32.mrf.mxu0  ;;  %v974_v51 = vpop.f32.mrf.mxu1 }
 0x17d   : > { %1030 = vst [vmem:[%s299_s7 + $0x10] sm:$0xff] %v1026_v44  ;;  %v1024_v22 = vadd.f32 %v1020_v45, %v972_v46  ;;  %v1023_v52 = vmul.f32 %v1019_v41, %v967_v47  ;;  %v959_v53 = vadd.f32 %v958_v14, %v856_v20  ;;  %v975_v56 = vadd.f32 %v974_v51, %v876_v31 }
 0x17f   : > { %1028 = vst [vmem:[%s299_s7] sm:$0xff] %v1024_v22  ;;  %v1027_v54 = vadd.f32 %v1023_v52, %v983_v1  ;;  %v1021_v55 = vmul.f32 %v1017_v50, %v959_v53 }
 0x181   : > { %1031 = vst [vmem:[%s299_s7 + $0x18] sm:$0xff] %v1027_v54  ;;  %v1025_v57 = vadd.f32 %v1021_v55, %v975_v56 }
 0x183   : > { %1029 = vst [vmem:[%s299_s7 + $0x8] sm:$0xff] %v1025_v57 }
 0x184   : > { %1318 = shalt.err (!%p1315_p5)
}
 0x185   : > { %s1319_s8 = scalar_lea.hbm %s1742_s17, 512  ;;  %s1323_s11 = scalar_lea.hbm %s1796_s5, 1024 }
 0x186   : > { %p1320_p6 = scmp.ne.s32.totalorder %s1742_s17, %s1319_s8  ;;  %p1324_p10 = scmp.lt.s32.totalorder %s1742_s17, %s1796_s5 }
 0x187   : > { %p1325_p11 = scmp.lt.s32.totalorder %s1323_s11, %s1319_s8 }
 0x188   : > { %p1321_p7 = pnand %p1320_p6, %p1463_p4 }
 0x189   : > { %p1326_p12 = por %p1325_p11, %p1324_p10 }
 0x18a   : > { %p1322_p9 = pneg %p1321_p7 }
 0x18c   : > { %p1327_p13 = pnand %p1326_p12, %p1322_p9 }
 0x18e   : > { %1330 = shalt.err (!%p1327_p13)
}
 0x18f   : > { %s1391_s14 = smov 128   ;;  %s1392_s15 = smov 8  }
 0x190   : > { %1231 = dma.vmem_to_hbm [thread:$0]  (%p1463_p4), %s1737_s13, 512, %s1742_s17, %s1746_s24, %s1391_s14, %s1391_s14, %s1392_s15  }
 0x191 PF: > { %p1237_p0 = scmp.ge.s32.totalorder %s1381_s23, 2  ;;  %s1062_s16 = sand.u32 1, %s1361_s18  }
 0x192   : > { %s1063_s21 = scalar_lea.sflag [#allocation3], %s1062_s16 }
 0x193   : > { %p1234_p1 = pnand %p1237_p0, %p1470_p8 }
 0x195   : > { %p1235_p2 = pneg %p1234_p1 }
 0x197   : > { %1356 = dma.done.wait (%p1235_p2), %s1063_s21, 512  }
 0x198   : > { %1358 = vsyncadd (%p1235_p2), %s1063_s21, 4294966784  ;;  %s18_s23 = sadd.s32 1, %s1381_s23   ;;  %s1799_s18 = smov %s1365_s19 }
 0x199   : > { %p15_p3 = scmp.ge.s32.totalorder %s18_s23, 4   ;;  %s1800_s19 = smov %s1369_s20 }
 0x19a   : > { %s1801_s20 = smov %s1476_s6  ;;  %s1802_s21 = smov %s1377_s22 }
 0x19b   : > { %s1803_s22 = smov %s1805_s26  ;;  %17 = sbr.rel (!%p15_p3) target bundleno = 4 (0x4), region = 87 }
 0x1a0   :  { %1068 = vsyncpa [#allocation3], 1 }
 0x1a1   :  { %1070 = vsyncpa [#allocation3 + $0x1], 1 }

</bundles_post_ra>
